<compile_context>
chip_gen: v7x
topology: tpu7x:2x2x1
jax: 0.10.0
libtpu: 0.0.40
codegen_flags: <defaults>
</compile_context>

<pallas_src>
import functools

import jax
import jax.numpy as jnp
from jax.experimental import pallas as pl
from jax.experimental.pallas import tpu as pltpu


def _round_up(n, m):
    return ((n + m - 1) // m) * m


def mlp_kernel(x_ref, w1_ref, b1_ref, w2_ref, b2_ref, o_ref):
    # x_ref: (TB, D_in) f32 | w1: (D_in, H) bf16 | b1: (1, H) f32
    # w2: (H, D_out) bf16   | b2: (1, D_out) f32 | o_ref: (TB, D_out) f32
    x = x_ref[...].astype(jnp.bfloat16)                       # in-kernel cast
    h = jnp.dot(x, w1_ref[...],
                preferred_element_type=jnp.float32)           # MXU, f32 accum
    h = jax.nn.sigmoid(h + b1_ref[...])                       # f32 bias + EUP
    y = jnp.dot(h.astype(jnp.bfloat16), w2_ref[...],
                preferred_element_type=jnp.float32)           # MXU, f32 accum
    o_ref[...] = (y + b2_ref[...]).astype(o_ref.dtype)


def prepare_params(w1, b1, w2, b2):
    """One-time (init-time) dtype prep so the per-call path does no param work."""
    return (w1.astype(jnp.bfloat16),
            b1.astype(jnp.float32).reshape(1, -1),
            w2.astype(jnp.bfloat16),
            b2.astype(jnp.float32).reshape(1, -1))


@functools.partial(jax.jit, static_argnames=("block_b",))
def mymodule_forward(x, w1, b1, w2, b2, *, block_b=512):
    """x: [B, d_in] f32; (w1, b1, w2, b2) from prepare_params()."""
    B, d_in = x.shape
    hidden = w1.shape[1]
    d_out = w2.shape[1]

    # Batch tile: multiple of 8; force >= 2 grid steps when B allows so the
    # "parallel" axis can use both v7x TensorCores and the pipeline overlaps.
    tb = min(block_b, _round_up(B, 8))
    if tb >= B and B >= 16:
        tb = _round_up((B + 1) // 2, 8)
    b_pad = _round_up(B, tb)

    # Only pad the batch (ragged last tile); no pad/cast pass in the common case.
    x_p = x if b_pad == B else jnp.zeros((b_pad, d_in), x.dtype).at[:B].set(x)

    cost = pl.CostEstimate(
        flops=2 * b_pad * (d_in * hidden + hidden * d_out),
        transcendentals=b_pad * hidden,
        bytes_accessed=(x_p.size * x_p.dtype.itemsize
                        + w1.size * 2 + w2.size * 2
                        + b1.size * 4 + b2.size * 4
                        + b_pad * d_out * 4),
    )

    out = pl.pallas_call(
        mlp_kernel,
        out_shape=jax.ShapeDtypeStruct((b_pad, d_out), jnp.float32),
        grid_spec=pltpu.PrefetchScalarGridSpec(
            num_scalar_prefetch=0,
            grid=(b_pad // tb,),
            in_specs=[
                pl.BlockSpec((tb, d_in), lambda i: (i, 0)),        # x tiles
                pl.BlockSpec((d_in, hidden), lambda i: (0, 0)),    # resident
                pl.BlockSpec((1, hidden), lambda i: (0, 0)),       # resident
                pl.BlockSpec((hidden, d_out), lambda i: (0, 0)),   # resident
                pl.BlockSpec((1, d_out), lambda i: (0, 0)),        # resident
            ],
            out_specs=pl.BlockSpec((tb, d_out), lambda i: (i, 0)),
        ),
        compiler_params=pltpu.CompilerParams(
            dimension_semantics=("parallel",)),
        cost_estimate=cost,
    )(x_p, w1, b1, w2, b2)

    return out if b_pad == B else out[:B]


def init_params(key, input_size, hidden_size, output_size):
    # Deterministic init mimicking nn.Linear's U(-1/sqrt(fan_in), 1/sqrt(fan_in)).
    k1, k2, k3, k4 = jax.random.split(key, 4)
    bound1 = 1.0 / jnp.sqrt(input_size)
    bound2 = 1.0 / jnp.sqrt(hidden_size)
    w1 = jax.random.uniform(k1, (input_size, hidden_size), jnp.float32,
                            -bound1, bound1)
    b1 = jax.random.uniform(k2, (1, hidden_size), jnp.float32,
                            -bound1, bound1)
    w2 = jax.random.uniform(k3, (hidden_size, output_size), jnp.float32,
                            -bound2, bound2)
    b2 = jax.random.uniform(k4, (1, output_size), jnp.float32,
                            -bound2, bound2)
    return w1, b1, w2, b2


def reference_forward_f32(x, w1, b1, w2, b2):
    h = jax.nn.sigmoid(x @ w1 + b1)
    return h @ w2 + b2


def reference_forward_bf16(x, w1, b1, w2, b2):
    # Same bf16-operand / f32-accumulation recipe as the kernel.
    h = jnp.dot(x.astype(jnp.bfloat16), w1.astype(jnp.bfloat16),
                preferred_element_type=jnp.float32) + b1
    h = jax.nn.sigmoid(h)
    return jnp.dot(h.astype(jnp.bfloat16), w2.astype(jnp.bfloat16),
                   preferred_element_type=jnp.float32) + b2


if __name__ == "__main__":
    # hidden=64 is fixed by the module; batch=256 with block_b=128 gives a
    # 2-step pipelined grid with tb | B (no padding, no output slice).
    batch, input_size, hidden_size, output_size = 256, 32, 64, 16

    key = jax.random.PRNGKey(0)
    kx, kp = jax.random.split(key)
    x = jax.random.normal(kx, (batch, input_size), jnp.float32)
    w1, b1, w2, b2 = init_params(kp, input_size, hidden_size, output_size)
    pw1, pb1, pw2, pb2 = prepare_params(w1, b1, w2, b2)

    y = mymodule_forward(x, pw1, pb1, pw2, pb2, block_b=128)
    y = jax.block_until_ready(y)

    assert y.shape == (batch, output_size)
    # Check against a reference using the same bf16-operand math.
    y_ref_bf16 = reference_forward_bf16(x, w1, b1, w2, b2)
    assert jnp.allclose(y, y_ref_bf16, atol=1e-2, rtol=1e-2)
    # Loose sanity check against the full-f32 PyTorch-equivalent forward.
    y_ref_f32 = reference_forward_f32(x, w1, b1, w2, b2)
    assert jnp.allclose(y, y_ref_f32, atol=1e-1, rtol=1e-1)

    print("KERNEL_OK")
</pallas_src>

<mosaic_0001>
module attributes {stable_mosaic.version = 11 : i64} {
  func.func @mlp_kernel(%arg0: i32, %arg1: memref<128x32xf32, #tpu.memory_space<vmem>>, %arg2: memref<32x64xbf16, #tpu.memory_space<vmem>>, %arg3: memref<1x64xf32, #tpu.memory_space<vmem>>, %arg4: memref<64x16xbf16, #tpu.memory_space<vmem>>, %arg5: memref<1x16xf32, #tpu.memory_space<vmem>>, %arg6: memref<128x16xf32, #tpu.memory_space<vmem>>) attributes {dimension_semantics = [#tpu.dimension_semantics<parallel>], iteration_bounds = array<i64: 2>, scalar_prefetch = 0 : i64, scratch_operands = 0 : i64, tpu.core_type = #tpu.core_type<tc>, window_params = [{transform_indices = @transform_0, window_bounds = array<i64: 128, 32>}, {pipeline_mode = #tpu.pipeline_mode<synchronous>, transform_indices = @transform_1, window_bounds = array<i64: 32, 64>}, {pipeline_mode = #tpu.pipeline_mode<synchronous>, transform_indices = @transform_2, window_bounds = array<i64: 1, 64>}, {pipeline_mode = #tpu.pipeline_mode<synchronous>, transform_indices = @transform_3, window_bounds = array<i64: 64, 16>}, {pipeline_mode = #tpu.pipeline_mode<synchronous>, transform_indices = @transform_4, window_bounds = array<i64: 1, 16>}, {transform_indices = @transform_5, window_bounds = array<i64: 128, 16>}]} {
    %c0 = arith.constant 0 : index
    %c0_0 = arith.constant 0 : index
    %0 = vector.load %arg1[%c0, %c0_0] : memref<128x32xf32, #tpu.memory_space<vmem>>, vector<128x32xf32>
    %1 = arith.truncf %0 : vector<128x32xf32> to vector<128x32xbf16>
    %c0_1 = arith.constant 0 : index
    %c0_2 = arith.constant 0 : index
    %2 = vector.load %arg2[%c0_1, %c0_2] : memref<32x64xbf16, #tpu.memory_space<vmem>>, vector<32x64xbf16>
    %cst = arith.constant dense<0.000000e+00> : vector<128x64xf32>
    %3 = tpu.matmul %1, %2, %cst {dimension_numbers = #tpu.dot_dimension_numbers<[1], [0], [0], [1], [0, 0, 1, 1], [], []>} : vector<128x32xbf16>, vector<32x64xbf16>, vector<128x64xf32> -> vector<128x64xf32>
    %c0_3 = arith.constant 0 : index
    %c0_4 = arith.constant 0 : index
    %4 = vector.load %arg3[%c0_3, %c0_4] : memref<1x64xf32, #tpu.memory_space<vmem>>, vector<1x64xf32>
    %5 = vector.broadcast %4 : vector<1x64xf32> to vector<128x64xf32>
    %6 = arith.addf %3, %5 : vector<128x64xf32>
    %7 = arith.negf %6 : vector<128x64xf32>
    %8 = math.exp %7 : vector<128x64xf32>
    %cst_5 = arith.constant 1.000000e+00 : f32
    %9 = vector.broadcast %cst_5 : f32 to vector<128x64xf32>
    %10 = arith.addf %9, %8 : vector<128x64xf32>
    %11 = arith.divf %9, %10 : vector<128x64xf32>
    %12 = arith.truncf %11 : vector<128x64xf32> to vector<128x64xbf16>
    %c0_6 = arith.constant 0 : index
    %c0_7 = arith.constant 0 : index
    %13 = vector.load %arg4[%c0_6, %c0_7] : memref<64x16xbf16, #tpu.memory_space<vmem>>, vector<64x16xbf16>
    %cst_8 = arith.constant dense<0.000000e+00> : vector<128x16xf32>
    %14 = tpu.matmul %12, %13, %cst_8 {dimension_numbers = #tpu.dot_dimension_numbers<[1], [0], [0], [1], [0, 0, 1, 1], [], []>} : vector<128x64xbf16>, vector<64x16xbf16>, vector<128x16xf32> -> vector<128x16xf32>
    %c0_9 = arith.constant 0 : index
    %c0_10 = arith.constant 0 : index
    %15 = vector.load %arg5[%c0_9, %c0_10] : memref<1x16xf32, #tpu.memory_space<vmem>>, vector<1x16xf32>
    %16 = vector.broadcast %15 : vector<1x16xf32> to vector<128x16xf32>
    %17 = arith.addf %14, %16 : vector<128x16xf32>
    %c0_11 = arith.constant 0 : index
    %c0_12 = arith.constant 0 : index
    %18 = vector.load %arg6[%c0_11, %c0_12] : memref<128x16xf32, #tpu.memory_space<vmem>>, vector<128x16xf32>
    tpu.vector_store %arg6[%c0_11, %c0_12], %17 {strides = array<i32>} : memref<128x16xf32, #tpu.memory_space<vmem>>, vector<128x16xf32>,
    return
  }
  func.func @transform_0(%arg0: i32) -> (i32, i32) {
    %c0_i32 = arith.constant 0 : i32
    %c0_i32_0 = arith.constant 0 : i32
    return %arg0, %c0_i32 : i32, i32
  }
  func.func @transform_1(%arg0: i32) -> (i32, i32) {
    %c0_i32 = arith.constant 0 : i32
    %c0_i32_0 = arith.constant 0 : i32
    %c0_i32_1 = arith.constant 0 : i32
    return %c0_i32, %c0_i32_0 : i32, i32
  }
  func.func @transform_2(%arg0: i32) -> (i32, i32) {
    %c0_i32 = arith.constant 0 : i32
    %c0_i32_0 = arith.constant 0 : i32
    %c0_i32_1 = arith.constant 0 : i32
    return %c0_i32, %c0_i32_0 : i32, i32
  }
  func.func @transform_3(%arg0: i32) -> (i32, i32) {
    %c0_i32 = arith.constant 0 : i32
    %c0_i32_0 = arith.constant 0 : i32
    %c0_i32_1 = arith.constant 0 : i32
    return %c0_i32, %c0_i32_0 : i32, i32
  }
  func.func @transform_4(%arg0: i32) -> (i32, i32) {
    %c0_i32 = arith.constant 0 : i32
    %c0_i32_0 = arith.constant 0 : i32
    %c0_i32_1 = arith.constant 0 : i32
    return %c0_i32, %c0_i32_0 : i32, i32
  }
  func.func @transform_5(%arg0: i32) -> (i32, i32) {
    %c0_i32 = arith.constant 0 : i32
    %c0_i32_0 = arith.constant 0 : i32
    return %arg0, %c0_i32 : i32, i32
  }
}

</mosaic_0001>

<bundles_post_ra>
// kernel: mymodule_forward.1
= control target key start
LH: loop header
LB: loop body
LE: loop exit
PB: predicated region body
PF: predicated region fallthrough
CT: control target
= control target key end

     0   :  { %s969_s18 = smov 0   ;;  %s1103_s0 = inlined_call_operand.vmem [shape: f32[256,32], index: 0, kind: input, shape index: {}]   ;;  %s1104_s1 = inlined_call_operand.vmem [shape: bf16[32,64], index: 1, kind: input, shape index: {}]   ;;  %s1105_s2 = inlined_call_operand.vmem [shape: f32[1,64], index: 2, kind: input, shape index: {}]   ;;  %s1106_s3 = inlined_call_operand.vmem [shape: bf16[64,16], index: 3, kind: input, shape index: {}]   ;;  %s1107_s4 = inlined_call_operand.vmem [shape: f32[1,16], index: 4, kind: input, shape index: {}]   ;;  %s1108_s5 = inlined_call_operand.vmem [shape: f32[256,16], index: 5, kind: output, shape index: {}]  }
   0x1 LB: > { %s736_s19 = sadd.s32 4294967295, %s937_s18   ;;  %p740_p0 = scmp.ge.s32.totalorder %s937_s18, 1  ;;  %s937_s18 = sphi %s969_s18, %s15_s18  }
   0x2   : > { %p188_p1 = scmp.lt.s32.totalorder %s937_s18, 3 }
   0x4   : > { %p189_p2 = pnand %p740_p0, %p188_p1 }
   0x5   : > { %v861_v0 = vld [vmem:[%s1104_s1] sm:$0xff] (!%p189_p2)   ;;  %s741_s22 = sshll.u32 (!%p189_p2), %s736_s19, 4  ;;  %v862_v1 = vld [vmem:[%s1104_s1 + $0x8] sm:$0xff] (!%p189_p2)   ;;  %vm276_vm0 = vcmask (!%p189_p2), 261120   ;;  %v865_v28 = vld [vmem:[%s1106_s3 + $0x10] sm:$0xff] (!%p189_p2)   ;;  %vm541_vm1 = vcmask (!%p189_p2), 523264  }
   0x6   : > { %192 = sbr.rel (%p189_p2) target bundleno = 509 (0x1fd), region = 40  ;;  %p217_p3 = scmp.lt.s32.totalorder (!%p189_p2), %s741_s22, 31  ;;  %809 = vmatprep.subr.bf16.mxu0 (!%p189_p2), %v861_v0  ;;  %v863_v26 = vld [vmem:[%s1106_s3] sm:$0xff] (!%p189_p2)   ;;  %v864_v27 = vld [vmem:[%s1106_s3 + $0x8] sm:$0xff] (!%p189_p2)   ;;  %v866_v29 = vld [vmem:[%s1106_s3 + $0x18] sm:$0xff] (!%p189_p2)   ;;  %vm663_vm2 = vcmask (!%p189_p2), 130048  }
   0x7   : > { %810 = vmatpush3.bf16.msra.mxu0 (!%p189_p2), %v861_v0  ;;  %829 = vmatprep.subr.bf16.mxu1 (!%p189_p2), %v863_v26  ;;  %v1032_v30 = vld [vmem:[%s1105_s2] ss:$0 sm:$0xff] (!%p189_p2) }
   0x8   : > { %811 = vmatprep.subr.bf16.mxu0 (!%p189_p2), %v862_v1  ;;  %830 = vmatpush3.bf16.msra.mxu1 (!%p189_p2), %v863_v26 }
   0x9   : > { %831 = vmatprep.subr.bf16.mxu1 (!%p189_p2), %v864_v27 }
   0xb   : > { %812 = vmatpush3.bf16.msra.mxu0 (!%p189_p2), %v862_v1 }
   0xc   : > { %832 = vmatpush3.bf16.msra.mxu1 (!%p189_p2), %v864_v27 }
   0xd   : > { %s1110_s22 = smov (!%p217_p3, %s741_s22), 31  ;;  %833 = vmatprep.subr.bf16.mxu1 %v865_v28 }
   0xe   : > { %s742_s25 = sshll.u32 %s1110_s22, 3 }
   0xf   : > { %s991_s28 = scalar_lea.vmem %s1103_s0, %s742_s25  ;;  %s1066_s19 = scalar_lea.vmem %s1108_s5, %s742_s25 }
  0x10   : > { %v229_v2 = vld [vmem:[%s991_s28] sm:$0xff]  ;;  %v230_v3 = vld [vmem:[%s991_s28 + $0x8] sm:$0xff]  ;;  %v231_v4 = vld [vmem:[%s991_s28 + $0x10] sm:$0xff]  ;;  %834 = vmatpush3.bf16.msra.mxu1 %v865_v28 }
  0x11   : > { %v245_v5 = vpack.c.bf16 %v230_v3, %v229_v2  ;;  %v232_v6 = vld [vmem:[%s991_s28 + $0x18] sm:$0xff]  ;;  %v233_v7 = vld [vmem:[%s991_s28 + $0x20] sm:$0xff]  ;;  %v234_v8 = vld [vmem:[%s991_s28 + $0x28] sm:$0xff]  ;;  %835 = vmatprep.subr.bf16.mxu1 %v866_v29 }
  0x12   : > { %v246_v9 = vpack.c.bf16 %v232_v6, %v231_v4  ;;  %v247_v10 = vpack.c.bf16 %v234_v8, %v233_v7  ;;  %v235_v11 = vld [vmem:[%s991_s28 + $0x30] sm:$0xff]  ;;  %v236_v12 = vld [vmem:[%s991_s28 + $0x38] sm:$0xff]  ;;  %v237_v13 = vld [vmem:[%s991_s28 + $0x40] sm:$0xff] }
  0x13   : > { %813 = vmatprep.mubr.msk.bf16.mxu0 %vm276_vm0, %v245_v5  ;;  %v238_v14 = vld [vmem:[%s991_s28 + $0x48] sm:$0xff]  ;;  %v248_v15 = vpack.c.bf16 %v236_v12, %v235_v11  ;;  %v239_v17 = vld [vmem:[%s991_s28 + $0x50] sm:$0xff]  ;;  %v240_v18 = vld [vmem:[%s991_s28 + $0x58] sm:$0xff] }
  0x14   : > { %814 = vmatmul.mubr.msk.bf16.vlgmr.msra.gmra.mrb[0].mxu0 %vm276_vm0, %v246_v9  ;;  %v249_v16 = vpack.c.bf16 %v238_v14, %v237_v13  ;;  %v241_v19 = vld [vmem:[%s991_s28 + $0x60] sm:$0xff]  ;;  %v242_v20 = vld [vmem:[%s991_s28 + $0x68] sm:$0xff]  ;;  %v250_v21 = vpack.c.bf16 %v240_v18, %v239_v17  ;;  %v243_v23 = vld [vmem:[%s991_s28 + $0x70] sm:$0xff]  ;;  %836 = vmatpush3.bf16.msra.mxu1 %v866_v29 }
  0x15   : > { %817 = vmatprep.mubr.msk.bf16.mxu0 %vm276_vm0, %v247_v10  ;;  %v251_v22 = vpack.c.bf16 %v242_v20, %v241_v19  ;;  %v244_v24 = vld [vmem:[%s991_s28 + $0x78] sm:$0xff] }
  0x16   : > { %v252_v25 = vpack.c.bf16 %v244_v24, %v243_v23 }
  0x1c   : > { %818 = vmatmul.mubr.msk.bf16.gmra.mrb[4].mxu0 %vm276_vm0, %v248_v15 }
  0x1d   : > { %821 = vmatprep.mubr.msk.bf16.mxu0 %vm276_vm0, %v249_v16 }
  0x24   : > { %822 = vmatmul.mubr.msk.bf16.gmra.mrb[8].mxu0 %vm276_vm0, %v250_v21 }
  0x25   : > { %825 = vmatprep.mubr.msk.bf16.mxu0 %vm276_vm0, %v251_v22 }
  0x2c   : > { %826 = vmatmul.mubr.msk.bf16.gmra.mrb[12].mxu0 %vm276_vm0, %v252_v25 }
  0xe7   : > { %v815_v31 = vpop.f32.mrb[0].mxu0 }
  0xe8   : > { %v344_v32 = vadd.f32 %v815_v31, %v1032_v30  ;;  %v335_v33 = vpop.f32.mrb[1].mxu0 }
  0xe9   : > { %v336_v34 = vadd.f32 %v1032_v30, %v335_v33  ;;  %v816_v35 = vpop.f32.mrb[2].mxu0 }
  0xea   : > { %v758_v36 = vmul.f32 -1.442695, %v344_v32  ;;  %v347_v37 = vadd.f32 %v816_v35, %v1032_v30  ;;  %v338_v38 = vpop.f32.mrb[3].mxu0 }
  0xeb   : > { %v756_v39 = vmul.f32 -1.442695, %v336_v34  ;;  %v339_v40 = vadd.f32 %v1032_v30, %v338_v38 }
  0xec   : > { %867 = vpow2.f32 %v758_v36  ;;  %v759_v41 = vmul.f32 -1.442695, %v347_v37 }
  0xed   : > { %869 = vpow2.f32 %v756_v39  ;;  %v757_v42 = vmul.f32 -1.442695, %v339_v40 }
  0xee   : > { %871 = vpow2.f32 %v759_v41 }
  0xef   : > { %873 = vpow2.f32 %v757_v42  ;;  %v819_v43 = vpop.f32.mrb[4].mxu0 }
  0xf0   : > { %v360_v44 = vadd.f32 %v819_v43, %v1032_v30  ;;  %v351_v45 = vpop.f32.mrb[5].mxu0 }
  0xf1   : > { %v352_v46 = vadd.f32 %v1032_v30, %v351_v45  ;;  %v820_v47 = vpop.f32.mrb[6].mxu0 }
  0xf2   : > { %v762_v48 = vmul.f32 -1.442695, %v360_v44  ;;  %v363_v49 = vadd.f32 %v820_v47, %v1032_v30  ;;  %v354_v50 = vpop.f32.mrb[7].mxu0 }
  0xf3   : > { %v760_v51 = vmul.f32 -1.442695, %v352_v46  ;;  %v355_v52 = vadd.f32 %v1032_v30, %v354_v50 }
  0xf4   : > { %875 = vpow2.f32 %v762_v48  ;;  %v763_v53 = vmul.f32 -1.442695, %v363_v49 }
  0xf5   : > { %877 = vpow2.f32 %v760_v51  ;;  %v761_v54 = vmul.f32 -1.442695, %v355_v52 }
  0xf6   : > { %v868_v55 = vpop.eup %867  ;;  %879 = vpow2.f32 %v763_v53 }
  0xf7   : > { %v870_v56 = vpop.eup %869  ;;  %v448_v57 = vadd.f32 1.0, %v868_v55  ;;  %881 = vpow2.f32 %v761_v54  ;;  %v823_v58 = vpop.f32.mrb[8].mxu0 }
  0xf8   : > { %v872_v59 = vpop.eup %871  ;;  %v446_v60 = vadd.f32 1.0, %v870_v56  ;;  %v376_v61 = vadd.f32 %v823_v58, %v1032_v30  ;;  %v367_v62 = vpop.f32.mrb[9].mxu0 }
  0xf9   : > { %v874_v63 = vpop.eup %873  ;;  %883 = vrcp.f32 %v448_v57  ;;  %v449_v0 = vadd.f32 1.0, %v872_v59  ;;  %v368_v1 = vadd.f32 %v1032_v30, %v367_v62  ;;  %v824_v2 = vpop.f32.mrb[10].mxu0 }
  0xfa   : > { %885 = vrcp.f32 %v446_v60  ;;  %v447_v3 = vadd.f32 1.0, %v874_v63  ;;  %v766_v4 = vmul.f32 -1.442695, %v376_v61  ;;  %v379_v5 = vadd.f32 %v824_v2, %v1032_v30  ;;  %v370_v6 = vpop.f32.mrb[11].mxu0 }
  0xfb   : > { %887 = vrcp.f32 %v449_v0  ;;  %v764_v7 = vmul.f32 -1.442695, %v368_v1  ;;  %v371_v8 = vadd.f32 %v1032_v30, %v370_v6 }
  0xfc   : > { %889 = vrcp.f32 %v447_v3  ;;  %v767_v9 = vmul.f32 -1.442695, %v379_v5 }
  0xfd   : > { %891 = vpow2.f32 %v766_v4  ;;  %v765_v10 = vmul.f32 -1.442695, %v371_v8 }
  0xfe   : > { %v876_v11 = vpop.eup %875  ;;  %893 = vpow2.f32 %v764_v7  ;;  %v772_v7 = vld [vmem:[%s1107_s4] ss:$0 sm:$0xff] }
  0xff   : > { %v878_v12 = vpop.eup %877  ;;  %v452_v13 = vadd.f32 1.0, %v876_v11  ;;  %895 = vpow2.f32 %v767_v9  ;;  %v827_v14 = vpop.f32.mrb[12].mxu0 }
 0x100   : > { %v880_v15 = vpop.eup %879  ;;  %v450_v16 = vadd.f32 1.0, %v878_v12  ;;  %897 = vpow2.f32 %v765_v10  ;;  %v392_v17 = vadd.f32 %v827_v14, %v1032_v30  ;;  %v383_v18 = vpop.f32.mrb[13].mxu0 }
 0x101   : > { %v882_v19 = vpop.eup %881  ;;  %899 = vrcp.f32 %v452_v13  ;;  %v453_v20 = vadd.f32 1.0, %v880_v15  ;;  %v384_v21 = vadd.f32 %v1032_v30, %v383_v18  ;;  %v828_v22 = vpop.f32.mrb[14].mxu0 }
 0x102   : > { %901 = vrcp.f32 %v450_v16  ;;  %v451_v23 = vadd.f32 1.0, %v882_v19  ;;  %v770_v24 = vmul.f32 -1.442695, %v392_v17  ;;  %v395_v25 = vadd.f32 %v828_v22, %v1032_v30  ;;  %v386_v26 = vpop.f32.mrb[15].mxu0 }
 0x103   : > { %v884_v27 = vpop.eup %883  ;;  %903 = vrcp.f32 %v453_v20  ;;  %v768_v28 = vmul.f32 -1.442695, %v384_v21  ;;  %v387_v29 = vadd.f32 %v1032_v30, %v386_v26 }
 0x104   : > { %v886_v31 = vpop.eup %885  ;;  %905 = vrcp.f32 %v451_v23  ;;  %v771_v32 = vmul.f32 -1.442695, %v395_v25 }
 0x105   : > { %v888_v33 = vpop.eup %887  ;;  %907 = vpow2.f32 %v770_v24  ;;  %v769_v34 = vmul.f32 -1.442695, %v387_v29 }
 0x106   : > { %v890_v35 = vpop.eup %889  ;;  %909 = vpow2.f32 %v768_v28  ;;  %v495_v36 = vpack.c.bf16 %v888_v33, %v884_v27 }
 0x107   : > { %v892_v37 = vpop.eup %891  ;;  %911 = vpow2.f32 %v771_v32  ;;  %v494_v38 = vpack.c.bf16 %v890_v35, %v886_v31 }
 0x108   : > { %v894_v39 = vpop.eup %893  ;;  %v456_v40 = vadd.f32 1.0, %v892_v37  ;;  %913 = vpow2.f32 %v769_v34 }
 0x109   : > { %v896_v41 = vpop.eup %895  ;;  %v454_v42 = vadd.f32 1.0, %v894_v39  ;;  %837 = vmatprep.mubr.msk.bf16.mxu1 %vm541_vm1, %v494_v38 }
 0x10a   : > { %v898_v30 = vpop.eup %897  ;;  %915 = vrcp.f32 %v456_v40  ;;  %v457_v43 = vadd.f32 1.0, %v896_v41  ;;  %838 = vmatmul.mubr.msk.bf16.vlgmr.msra.gmra.mrb[0].mxu1 %vm541_vm1, %v495_v36 }
 0x10b   : > { %v900_v44 = vpop.eup %899  ;;  %917 = vrcp.f32 %v454_v42  ;;  %v455_v45 = vadd.f32 1.0, %v898_v30 }
 0x10c   : > { %v902_v46 = vpop.eup %901  ;;  %919 = vrcp.f32 %v457_v43 }
 0x10d   : > { %v904_v47 = vpop.eup %903  ;;  %921 = vrcp.f32 %v455_v45 }
 0x10e   : > { %v906_v48 = vpop.eup %905  ;;  %v497_v49 = vpack.c.bf16 %v904_v47, %v900_v44 }
 0x10f   : > { %v908_v50 = vpop.eup %907  ;;  %v496_v51 = vpack.c.bf16 %v906_v48, %v902_v46 }
 0x110   : > { %v910_v52 = vpop.eup %909  ;;  %v460_v53 = vadd.f32 1.0, %v908_v50 }
 0x111   : > { %v912_v54 = vpop.eup %911  ;;  %v458_v55 = vadd.f32 1.0, %v910_v52  ;;  %841 = vmatprep.mubr.msk.bf16.mxu1 %vm541_vm1, %v496_v51 }
 0x112   : > { %v914_v56 = vpop.eup %913  ;;  %923 = vrcp.f32 %v460_v53  ;;  %v461_v57 = vadd.f32 1.0, %v912_v54  ;;  %842 = vmatmul.mubr.msk.bf16.gmra.mrb[4].mxu1 %vm541_vm1, %v497_v49 }
 0x113   : > { %925 = vrcp.f32 %v458_v55  ;;  %v459_v58 = vadd.f32 1.0, %v914_v56 }
 0x114   : > { %v916_v59 = vpop.eup %915  ;;  %927 = vrcp.f32 %v461_v57 }
 0x115   : > { %v918_v60 = vpop.eup %917  ;;  %929 = vrcp.f32 %v459_v58 }
 0x116   : > { %v920_v61 = vpop.eup %919 }
 0x117   : > { %v922_v62 = vpop.eup %921  ;;  %v499_v63 = vpack.c.bf16 %v920_v61, %v916_v59 }
 0x118   : > { %v498_v0 = vpack.c.bf16 %v922_v62, %v918_v60 }
 0x11a   : > { %845 = vmatprep.mubr.msk.bf16.mxu1 %vm541_vm1, %v498_v0 }
 0x11b   : > { %846 = vmatmul.mubr.msk.bf16.gmra.mrb[8].mxu1 %vm541_vm1, %v499_v63 }
 0x11c   : > { %v924_v1 = vpop.eup %923 }
 0x11d   : > { %v926_v2 = vpop.eup %925 }
 0x11e   : > { %v928_v3 = vpop.eup %927 }
 0x11f   : > { %v930_v4 = vpop.eup %929  ;;  %v501_v5 = vpack.c.bf16 %v928_v3, %v924_v1 }
 0x120   : > { %v500_v6 = vpack.c.bf16 %v930_v4, %v926_v2 }
 0x122   : > { %849 = vmatprep.mubr.msk.bf16.mxu1 %vm541_vm1, %v500_v6 }
 0x123   : > { %850 = vmatmul.mubr.msk.bf16.gmra.mrb[12].mxu1 %vm541_vm1, %v501_v5 }
 0x1dd   : > { %v839_v8 = vpop.f32.mrb[0].mxu1 }
 0x1de   : > { %v609_v9 = vadd.f32 %v839_v8, %v772_v7  ;;  %v600_v10 = vpop.f32.mrb[1].mxu1 }
 0x1df   : > { %v601_v11 = vadd.f32 %v772_v7, %v600_v10  ;;  %v840_v12 = vpop.f32.mrb[2].mxu1 }
 0x1e0   : > { %666 = vst.msk [vmem:[%s1066_s19 + $0x10] sm:$0xff] %vm663_vm2, %v609_v9  ;;  %v612_v13 = vadd.f32 %v840_v12, %v772_v7  ;;  %v603_v14 = vpop.f32.mrb[3].mxu1 }
 0x1e1   : > { %664 = vst.msk [vmem:[%s1066_s19] sm:$0xff] %vm663_vm2, %v601_v11  ;;  %v604_v15 = vadd.f32 %v772_v7, %v603_v14 }
 0x1e2   : > { %667 = vst.msk [vmem:[%s1066_s19 + $0x18] sm:$0xff] %vm663_vm2, %v612_v13 }
 0x1e3   : > { %665 = vst.msk [vmem:[%s1066_s19 + $0x8] sm:$0xff] %vm663_vm2, %v604_v15 }
 0x1e5   : > { %v843_v16 = vpop.f32.mrb[4].mxu1 }
 0x1e6   : > { %v625_v17 = vadd.f32 %v843_v16, %v772_v7  ;;  %v616_v18 = vpop.f32.mrb[5].mxu1 }
 0x1e7   : > { %v617_v19 = vadd.f32 %v772_v7, %v616_v18  ;;  %v844_v20 = vpop.f32.mrb[6].mxu1 }
 0x1e8   : > { %670 = vst.msk [vmem:[%s1066_s19 + $0x30] sm:$0xff] %vm663_vm2, %v625_v17  ;;  %v628_v21 = vadd.f32 %v844_v20, %v772_v7  ;;  %v619_v22 = vpop.f32.mrb[7].mxu1 }
 0x1e9   : > { %668 = vst.msk [vmem:[%s1066_s19 + $0x20] sm:$0xff] %vm663_vm2, %v617_v19  ;;  %v620_v23 = vadd.f32 %v772_v7, %v619_v22 }
 0x1ea   : > { %671 = vst.msk [vmem:[%s1066_s19 + $0x38] sm:$0xff] %vm663_vm2, %v628_v21 }
 0x1eb   : > { %669 = vst.msk [vmem:[%s1066_s19 + $0x28] sm:$0xff] %vm663_vm2, %v620_v23 }
 0x1ee   : > { %v847_v24 = vpop.f32.mrb[8].mxu1 }
 0x1ef   : > { %v641_v25 = vadd.f32 %v847_v24, %v772_v7  ;;  %v632_v26 = vpop.f32.mrb[9].mxu1 }
 0x1f0   : > { %v633_v27 = vadd.f32 %v772_v7, %v632_v26  ;;  %v848_v28 = vpop.f32.mrb[10].mxu1 }
 0x1f1   : > { %674 = vst.msk [vmem:[%s1066_s19 + $0x50] sm:$0xff] %vm663_vm2, %v641_v25  ;;  %v644_v29 = vadd.f32 %v848_v28, %v772_v7  ;;  %v635_v31 = vpop.f32.mrb[11].mxu1 }
 0x1f2   : > { %672 = vst.msk [vmem:[%s1066_s19 + $0x40] sm:$0xff] %vm663_vm2, %v633_v27  ;;  %v636_v32 = vadd.f32 %v772_v7, %v635_v31 }
 0x1f3   : > { %675 = vst.msk [vmem:[%s1066_s19 + $0x58] sm:$0xff] %vm663_vm2, %v644_v29 }
 0x1f4   : > { %673 = vst.msk [vmem:[%s1066_s19 + $0x48] sm:$0xff] %vm663_vm2, %v636_v32 }
 0x1f6   : > { %v851_v33 = vpop.f32.mrb[12].mxu1 }
 0x1f7   : > { %v657_v34 = vadd.f32 %v851_v33, %v772_v7  ;;  %v648_v35 = vpop.f32.mrb[13].mxu1 }
 0x1f8   : > { %v649_v36 = vadd.f32 %v772_v7, %v648_v35  ;;  %v852_v37 = vpop.f32.mrb[14].mxu1 }
 0x1f9   : > { %678 = vst.msk [vmem:[%s1066_s19 + $0x70] sm:$0xff] %vm663_vm2, %v657_v34  ;;  %v660_v38 = vadd.f32 %v852_v37, %v772_v7  ;;  %v651_v39 = vpop.f32.mrb[15].mxu1 }
 0x1fa   : > { %676 = vst.msk [vmem:[%s1066_s19 + $0x60] sm:$0xff] %vm663_vm2, %v649_v36  ;;  %v652_v40 = vadd.f32 %v772_v7, %v651_v39 }
 0x1fb   : > { %679 = vst.msk [vmem:[%s1066_s19 + $0x78] sm:$0xff] %vm663_vm2, %v660_v38 }
 0x1fc   : > { %677 = vst.msk [vmem:[%s1066_s19 + $0x68] sm:$0xff] %vm663_vm2, %v652_v40 }
 0x1fd PF: > { %s15_s18 = sadd.s32 1, %s937_s18  }
 0x1fe   : > { %p12_p4 = scmp.ge.s32.totalorder %s15_s18, 4  }
 0x200   :  { %14 = sbr.rel (!%p12_p4) target bundleno = 1 (0x1), region = 70 }

</bundles_post_ra>
